<compile_context>
chip_gen: v6e
topology: v6e:2x2x1
jax: 0.10.0
libtpu: 0.0.40
codegen_flags: <defaults>
</compile_context>

<pallas_src>
import numpy as np

import jax
import jax.numpy as jnp
from jax.experimental import pallas as pl
from jax.experimental.pallas import tpu as pltpu

_LANE = 128


def _round_up(n, m):
    return ((n + m - 1) // m) * m


def _make_kernel(mxu_dtype):
    def kernel(x_ref, m_ref, fe_ref, o_ref):
        # Grid = (I tiles, B); batch index along axis 1.
        b = pl.program_id(1)

        @pl.when(b == 0)
        def _compute():
            # NOTE: on a partial last I tile the out-of-bounds lanes of x_ref hold
            # garbage; exp/matmul of those columns is harmless because the matmul is
            # column-independent and the corresponding output stores are masked.
            k = jnp.exp(-x_ref[...]).astype(mxu_dtype)                     # EUP
            conv = jnp.dot(m_ref[...].astype(mxu_dtype), k,
                           preferred_element_type=jnp.float32)             # MXU
            o_ref[...] = (conv + fe_ref[...]).astype(o_ref.dtype)          # VPU

        @pl.when(b != 0)
        def _zero():
            # Reference module only ever writes batch 0; remaining batches are zero.
            o_ref[...] = jnp.zeros_like(o_ref)

    return kernel


def _choose_i_tile(i_dim, j_dim, tile_budget_bytes=32 << 20):
    """Pick the lane (I-axis) tile.

    Largest lane-dense tile (multiple of 128, capped at 2048) such that the
    double-buffered f32 x/out tiles (16*J*TI bytes) plus the double-buffered JxJ
    Toeplitz matrix (8*J^2 bytes) stay within the tile budget (headroom below the
    48 MiB scoped VMEM limit we request, itself below v7x's 64 MiB physical VMEM).
    Small problems use one full-extent block (exact dims, no masked stores); larger
    ones keep >= 2 lane tiles so the parallel I grid axis can use both v7x cores.
    """
    i_pad = _round_up(i_dim, _LANE)
    cap = (tile_budget_bytes - 8 * j_dim * j_dim) // (16 * j_dim)
    cap = max(_LANE, (cap // _LANE) * _LANE)
    ti = min(2048, cap, i_pad)
    if ti >= i_pad:
        if i_pad >= 2 * _LANE:
            # Split so the "parallel" I axis has >= 2 tiles (v7x megacore sharding).
            ti = _round_up(pl.cdiv(i_pad, 2), _LANE)
        else:
            ti = i_dim  # single full-extent block: no padding, no partial stores
    return ti


def memint_pallas(x, fe, h, dt=0.01, *, mxu_dtype=jnp.float32):
    """x: (B, J, I), fe: (1, J), h: (1, J) -> (B, J, I) float32 (b > 0 rows are zero).

    Pass mxu_dtype=jnp.bfloat16 on v6e/v7x when J >= ~256 (matmul-bound regime) and
    looser tolerances are acceptable; accumulation stays f32 either way.
    """
    B, J, I = x.shape
    x = jnp.asarray(x, jnp.float32)
    h_flat = jnp.asarray(h, jnp.float32).reshape(J)
    fe_col = jnp.asarray(fe, jnp.float32).reshape(J, 1)

    # Fold dt + both half-weight corrections into one lower-triangular Toeplitz matrix:
    #   L[j,m] = h[j-m] (m<=j);  M = -dt*L;  M[:,0] *= 0.5;  M -= 0.5*dt*h[0]*I
    # so that  out[:, i] = M @ exp(-x[0, :, i]) + fe   reproduces the reference exactly
    # (including the j=0 row and the doubled m=j term).
    idx = jnp.arange(J)
    diff = idx[:, None] - idx[None, :]
    L = jnp.where(diff >= 0, h_flat[jnp.clip(diff, 0, J - 1)], 0.0).astype(jnp.float32)
    M = -dt * L
    M = M.at[:, 0].multiply(0.5)
    M = M - 0.5 * dt * h_flat[0] * jnp.eye(J, dtype=jnp.float32)
    # TODO(synk): optionally ship x itself in bf16 to halve HBM reads once tolerances
    # are deliberately relaxed; kept f32 here for parity with the reference.

    ti = _choose_i_tile(I, J)
    n_i = pl.cdiv(I, ti)
    i_cov = n_i * ti  # lanes actually touched (last block may be partial)

    cost = pl.CostEstimate(
        flops=int(2 * J * J * i_cov),
        transcendentals=int(J * i_cov),
        bytes_accessed=int(4 * (J * I + B * J * I + J * J + J)),
    )

    return pl.pallas_call(
        _make_kernel(mxu_dtype),
        out_shape=jax.ShapeDtypeStruct((B, J, I), jnp.float32),
        grid_spec=pltpu.PrefetchScalarGridSpec(
            num_scalar_prefetch=0,
            # Batch innermost: the x block index (pinned to batch 0) is unchanged
            # across consecutive b steps, so the pipeline skips the redundant x DMA.
            grid=(n_i, B),
            in_specs=[
                pl.BlockSpec((None, J, ti), lambda t, b: (0, 0, t)),  # x, batch 0 only
                pl.BlockSpec((J, J), lambda t, b: (0, 0)),            # folded Toeplitz M
                pl.BlockSpec((J, 1), lambda t, b: (0, 0)),            # fe column
            ],
            out_specs=pl.BlockSpec((None, J, ti), lambda t, b: (b, 0, t)),
        ),
        compiler_params=pltpu.CompilerParams(
            # Independent (I tile, batch) outputs -> megacore-shardable on v7x;
            # no-op on single-core v5e/v6e.
            dimension_semantics=("parallel", "parallel"),
            # Above v5e's 16 MiB scoped default, below v7x's 64 MiB physical VMEM;
            # the 32 MiB tile budget leaves headroom underneath.
            vmem_limit_bytes=48 << 20,
        ),
        cost_estimate=cost,
    )(x, M, fe_col)


def memint_reference(x, fe, h, dt=0.01):
    """Direct numpy transliteration of the PyTorch loops (for validation)."""
    x = np.asarray(x, dtype=np.float32)
    fe = np.asarray(fe, dtype=np.float32)
    hv = np.asarray(h, dtype=np.float32).reshape(x.shape[1])
    B, J, I = x.shape
    out = np.zeros((B, J, I), dtype=np.float32)
    for i in range(I):
        k = np.zeros(J, dtype=np.float32)
        for j in range(J):
            k[j] = np.exp(-x[0, j, i])
            conv = np.sum(k[1:j + 1] * hv[:j][::-1])
            out[0, j, i] = (-0.5 * dt * k[0] * hv[j]
                            - 0.5 * dt * k[j] * hv[0]
                            - dt * conv
                            + fe[0, j])
    return out


if __name__ == "__main__":
    B, J, I = 2, 8, 16
    dt = 0.01

    key = jax.random.PRNGKey(0)
    kx, kfe, kh = jax.random.split(key, 3)
    x = jax.random.normal(kx, (B, J, I), dtype=jnp.float32)
    fe = jax.random.normal(kfe, (1, J), dtype=jnp.float32)
    h = jax.random.normal(kh, (1, J), dtype=jnp.float32)

    out = memint_pallas(x, fe, h, dt=dt)
    out = jax.block_until_ready(out)

    ref = memint_reference(np.asarray(x), np.asarray(fe), np.asarray(h), dt=dt)
    np.testing.assert_allclose(np.asarray(out), ref, rtol=1e-5, atol=1e-5)

    print("KERNEL_OK")
</pallas_src>

<mosaic_0001>
module attributes {stable_mosaic.version = 11 : i64} {
  func.func @kernel(%arg0: i32, %arg1: i32, %arg2: memref<1x8x16xf32, #tpu.memory_space<vmem>>, %arg3: memref<8x8xf32, #tpu.memory_space<vmem>>, %arg4: memref<8x1xf32, #tpu.memory_space<vmem>>, %arg5: memref<1x8x16xf32, #tpu.memory_space<vmem>>) attributes {dimension_semantics = [#tpu.dimension_semantics<parallel>, #tpu.dimension_semantics<parallel>], iteration_bounds = array<i64: 1, 2>, scalar_prefetch = 0 : i64, scratch_operands = 0 : i64, tpu.core_type = #tpu.core_type<tc>, window_params = [{transform_indices = @transform_0, window_bounds = array<i64: 1, 8, 16>}, {pipeline_mode = #tpu.pipeline_mode<synchronous>, transform_indices = @transform_1, window_bounds = array<i64: 8, 8>}, {pipeline_mode = #tpu.pipeline_mode<synchronous>, transform_indices = @transform_2, window_bounds = array<i64: 8, 1>}, {transform_indices = @transform_3, window_bounds = array<i64: 1, 8, 16>}]} {
    %c0_i32 = arith.constant 0 : i32
    %0 = arith.cmpi eq, %arg1, %c0_i32 : i32
    %1 = arith.extui %0 : i1 to i32
    %c0_i32_0 = arith.constant 0 : i32
    %2 = arith.cmpi ne, %1, %c0_i32_0 : i32
    scf.if %2 {
      %c0 = arith.constant 0 : index
      %c0_3 = arith.constant 0 : index
      %c0_4 = arith.constant 0 : index
      %6 = vector.load %arg2[%c0, %c0_3, %c0_4] : memref<1x8x16xf32, #tpu.memory_space<vmem>>, vector<1x8x16xf32>
      %7 = vector.shape_cast %6 : vector<1x8x16xf32> to vector<8x16xf32>
      %cst = arith.constant 0.000000e+00 : f32
      %8 = vector.broadcast %cst : f32 to vector<8x16xf32>
      %9 = arith.subf %8, %7 : vector<8x16xf32>
      %10 = math.exp %9 : vector<8x16xf32>
      %c0_5 = arith.constant 0 : index
      %c0_6 = arith.constant 0 : index
      %11 = vector.load %arg3[%c0_5, %c0_6] : memref<8x8xf32, #tpu.memory_space<vmem>>, vector<8x8xf32>
      %cst_7 = arith.constant dense<0.000000e+00> : vector<8x16xf32>
      %12 = tpu.matmul %11, %10, %cst_7 {dimension_numbers = #tpu.dot_dimension_numbers<[1], [0], [0], [1], [0, 0, 1, 1], [], []>} : vector<8x8xf32>, vector<8x16xf32>, vector<8x16xf32> -> vector<8x16xf32>
      %c0_8 = arith.constant 0 : index
      %c0_9 = arith.constant 0 : index
      %13 = vector.load %arg4[%c0_8, %c0_9] : memref<8x1xf32, #tpu.memory_space<vmem>>, vector<8x1xf32>
      %14 = vector.broadcast %13 : vector<8x1xf32> to vector<8x16xf32>
      %15 = arith.addf %12, %14 : vector<8x16xf32>
      %c0_10 = arith.constant 0 : index
      %c0_11 = arith.constant 0 : index
      %c0_12 = arith.constant 0 : index
      %16 = vector.load %arg5[%c0_10, %c0_11, %c0_12] : memref<1x8x16xf32, #tpu.memory_space<vmem>>, vector<1x8x16xf32>
      %17 = vector.shape_cast %16 : vector<1x8x16xf32> to vector<8x16xf32>
      %18 = vector.shape_cast %15 : vector<8x16xf32> to vector<1x8x16xf32>
      tpu.vector_store %arg5[%c0_10, %c0_11, %c0_12], %18 {strides = array<i32>} : memref<1x8x16xf32, #tpu.memory_space<vmem>>, vector<1x8x16xf32>,
    } else {
    }
    %c0_i32_1 = arith.constant 0 : i32
    %3 = arith.cmpi ne, %arg1, %c0_i32_1 : i32
    %4 = arith.extui %3 : i1 to i32
    %c0_i32_2 = arith.constant 0 : i32
    %5 = arith.cmpi ne, %4, %c0_i32_2 : i32
    scf.if %5 {
      %cst = arith.constant 0.000000e+00 : f32
      %6 = vector.broadcast %cst : f32 to vector<8x16xf32>
      %c0 = arith.constant 0 : index
      %c0_3 = arith.constant 0 : index
      %c0_4 = arith.constant 0 : index
      %7 = vector.load %arg5[%c0, %c0_3, %c0_4] : memref<1x8x16xf32, #tpu.memory_space<vmem>>, vector<1x8x16xf32>
      %8 = vector.shape_cast %7 : vector<1x8x16xf32> to vector<8x16xf32>
      %9 = vector.shape_cast %6 : vector<8x16xf32> to vector<1x8x16xf32>
      tpu.vector_store %arg5[%c0, %c0_3, %c0_4], %9 {strides = array<i32>} : memref<1x8x16xf32, #tpu.memory_space<vmem>>, vector<1x8x16xf32>,
    } else {
    }
    return
  }
  func.func @transform_0(%arg0: i32, %arg1: i32) -> (i32, i32, i32) {
    %c0_i32 = arith.constant 0 : i32
    %c0_i32_0 = arith.constant 0 : i32
    %c0_i32_1 = arith.constant 0 : i32
    return %c0_i32, %c0_i32_0, %arg0 : i32, i32, i32
  }
  func.func @transform_1(%arg0: i32, %arg1: i32) -> (i32, i32) {
    %c0_i32 = arith.constant 0 : i32
    %c0_i32_0 = arith.constant 0 : i32
    %c0_i32_1 = arith.constant 0 : i32
    return %c0_i32, %c0_i32_0 : i32, i32
  }
  func.func @transform_2(%arg0: i32, %arg1: i32) -> (i32, i32) {
    %c0_i32 = arith.constant 0 : i32
    %c0_i32_0 = arith.constant 0 : i32
    %c0_i32_1 = arith.constant 0 : i32
    return %c0_i32, %c0_i32_0 : i32, i32
  }
  func.func @transform_3(%arg0: i32, %arg1: i32) -> (i32, i32, i32) {
    %c0_i32 = arith.constant 0 : i32
    %c0_i32_0 = arith.constant 0 : i32
    return %arg1, %c0_i32, %arg0 : i32, i32, i32
  }
}

</mosaic_0001>

<bundles_post_ra>
// kernel: tpu_custom_call.1
= control target key start
LH: loop header
LB: loop body
LE: loop exit
PB: predicated region body
PF: predicated region fallthrough
CT: control target
= control target key end

     0   :  { %8 = vsyncpa [#allocation3], 0  ;;  %s725_s0 = inlined_call_operand.hbm [shape: f32[2,8,16], index: 0, kind: input, shape index: {}]   ;;  %s726_s1 = inlined_call_operand.vmem [shape: f32[8,8], index: 1, kind: input, shape index: {}]   ;;  %s727_s2 = inlined_call_operand.vmem [shape: f32[8,1], index: 2, kind: input, shape index: {}]   ;;  %s728_s3 = inlined_call_operand.hbm [shape: f32[2,8,16], index: 3, kind: output, shape index: {}]  }
   0x1   :  { %9 = vsyncpa [#allocation4], 0 }
   0x2   :  { %11 = vsyncpa [#allocation4 + $0x1], 0  ;;  %s593_s12 = smov 0   ;;  %s595_s13 = smov 0  }
   0x3   :  { %s597_s14 = smov 0   ;;  %s599_s15 = smov 0  }
   0x4   :  { %s601_s16 = smov 0   ;;  %s603_s17 = smov 0  }
   0x5 LB: > { %s365_s18 = sadd.s32 4294967295, %s565_s17   ;;  %s366_s19 = sadd.s32 4294967294, %s565_s17   ;;  %s565_s17 = sphi %s603_s17, %s17_s17   ;;  %s561_s16 = sphi %s601_s16, %s737_s16   ;;  %s557_s15 = sphi %s599_s15, %s736_s15   ;;  %s553_s14 = sphi %s597_s14, %s735_s14   ;;  %s549_s13 = sphi %s595_s13, %s734_s13   ;;  %s545_s12 = sphi %s593_s12, %s733_s12  }
   0x6   : > { %s26_s20 = sadd.s32 1, %s561_s16  ;;  %s106_s21 = sadd.s32 1, %s553_s14 }
   0x7   : > { %p27_p0 = scmp.ge.s32.totalorder %s26_s20, 2  ;;  %p116_p1 = scmp.ne.s32.totalorder %s553_s14, %s549_s13 }
   0x8   : > { %p117_p2 = scmp.eq.s32.totalorder %s365_s18, 1  ;;  %p122_p3 = scmp.ne.s32.totalorder %s549_s13, %s545_s12 }
   0x9   : > { %s739_s20 = smov (%p27_p0, %s26_s20), 0  ;;  %p123_p5 = scmp.eq.s32.totalorder %s366_s19, 1 }
   0xa   : > { %p633_p4 = por %p117_p2, %p116_p1  ;;  %s101_s23 = ssub.s32 %s561_s16, %s739_s20 }
   0xb   : > { %p367_p6 = scmp.ge.s32.totalorder %s565_s17, 1  ;;  %p104_p7 = scmp.eq.s32.totalorder %s101_s23, 0 }
   0xc   : > { %p640_p8 = por %p123_p5, %p122_p3  ;;  %p130_p9 = scmp.lt.s32.totalorder %s565_s17, 3 }
   0xd   : > { %s646_s25 = scalar_select %p104_p7, %s553_s14, %s106_s21  }
   0xe   : > { %p648_p10 = pnand %p367_p6, %p130_p9  ;;  %p652_p11 = scmp.eq.s32.totalorder %s365_s18, 0 }
   0xf   : > { %s567_s28 = smov [#allocation2]  }
  0x10   : > { %p392_p12 = pneg %p648_p10  ;;  %s145_s29 = sshll.u32 %s567_s28, 4  ;;  %s146_s29 = int_to_ptr.vmem [resolvable:$true] %s145_s29 }
  0x11   : > { %s470_s30 = scalar_lea.vmem %s146_s29, 128  ;;  %p478_p5 = scmp.lt.s32.totalorder %s146_s29, %s146_s29 }
  0x12   : > { %p393_p13 = pnand %p652_p11, %p392_p12  ;;  %p471_p1 = scmp.ne.s32.totalorder %s146_s29, %s470_s30 }
  0x13   : > { %p479_p6 = scmp.lt.s32.totalorder %s470_s30, %s470_s30 }
  0x14   : > { %p461_p0 = pneg %p393_p13 }
  0x15   : > { %p480_p7 = por %p479_p6, %p478_p5 }
  0x16   : > { %p473_p2 = pnand %p471_p1, %p461_p0 }
  0x18   : > { %p474_p3 = pneg %p473_p2 }
  0x1a   : > { %p481_p9 = pnand %p480_p7, %p474_p3 }
  0x1c   : > { %484 = shalt.err (!%p481_p9)
}
  0x1d   : > { %395 = dma.hbm_to_vmem [thread:$0]  (!%p393_p13), %s725_s0, 128, %s146_s29, [#allocation3]  }
  0x1e   : > { %164 = sbr.rel (%p648_p10) target bundleno = 291 (0x123), region = 32 }
  0x23   : > { %536 = dma.done.wait (%p652_p11), [#allocation3], 128  }
  0x24   : > { %538 = vsyncadd (%p652_p11), [#allocation3], 4294967168  ;;  %s180_s6 = sand.u32 1, %s549_s13   ;;  %p372_p12 = scmp.ne.s32.totalorder %s557_s15, 0 }
  0x25   : > { %s371_s7 = sshll.u32 %s180_s6, 3 }
  0x26   : > { %s672_s8 = scalar_lea.vmem [#allocation5], %s371_s7  ;;  %186 = sbr.rel (%p372_p12) target bundleno = 259 (0x103), region = 40 }
  0x2b   : > { %v187_v0 = vld [vmem:[#allocation2] sm:$0xff]  ;;  %v568_v1 = vmov 0.0   ;;  %vm569_vm0 = vmmov 0   ;;  %v570_v4 = vmov 0   ;;  %vm198_vm1 = vcmask 64512  }
  0x2c   : > { %381 = vmatprep.subr.mxu0 %v568_v1  ;;  %v188_v2 = vsub.f32 0.0, %v187_v0  ;;  %383 = vmatprep.mubr.msk.f32.mxu0 %vm569_vm0, %v568_v1  ;;  %v192_v3 = vld [vmem:[%s727_s2] sm:$0xff]  ;;  %vm272_vm2 = vcmask 130048  }
  0x2d   : > { %456 = vset.pattern.permute.xlu0 %v570_v4  ;;  %v191_v6 = vld [vmem:[%s726_s1] sm:$0xff] }
  0x2e   : > { %v189_v5 = vmul.f32 1.442695, %v188_v2  ;;  %195 = vperm.xlu0 %456, %v192_v3  }
  0x30   : > { %457 = vpow2.f32 %v189_v5 }
  0x3d   : > { %v458_v7 = vpop.eup %457 }
  0x3e   : > { %382 = vmatpush3.msra.mxu0 %v458_v7 }
  0x3f   : > { %384 = vmatmul.mubr.msk.f32.vlgmr.msra.gmra.mxu0 %vm198_vm1, %v191_v6 }
  0xa9   : > { %v196_v8 = vpop.permute.xlu0 %195 }
  0xff   : > { %v268_v9 = vpop.f32.mrf.mxu0 }
 0x100   : > { %v269_v10 = vadd.f32 %v268_v9, %v196_v8 }
 0x101   : > { %v385_v11 = vpop.f32.mrf.mxu0 }
 0x102   : > { %273 = vst.msk [vmem:[%s672_s8] sm:$0xff] %vm272_vm2, %v269_v10 }
 0x103 PF: > { %p374_p10 = scmp.eq.s32.totalorder %s557_s15, 0 }
 0x105   : > { %277 = sbr.rel (%p374_p10) target bundleno = 268 (0x10c), region = 44 }
 0x10a   : > { %vm278_vm3 = vcmask 130048   ;;  %v571_v12 = vmov 0.0  }
 0x10b   : > { %279 = vst.msk [vmem:[%s672_s8] sm:$0xff] %vm278_vm3, %v571_v12 }
 0x10c PF: > { %s376_s19 = sshll.u32 %s557_s15, 7  ;;  %s295_s27 = sshll.u32 %s672_s8, 4  ;;  %s296_s27 = int_to_ptr.vmem [resolvable:$true] %s295_s27 }
 0x10d   : > { %s293_s26 = scalar_lea.hbm %s728_s3, %s376_s19  ;;  %s281_s28 = scalar_lea.sflag [#allocation4], %s180_s6 }
 0x10e   : > { %s485_s29 = scalar_lea.vmem %s296_s27, 128  ;;  %s572_s30 = smov [#allocation5]  }
 0x10f   : > { %p486_p11 = scmp.ne.s32.totalorder %s296_s27, %s485_s29  ;;  %s489_s4 = sshll.u32 %s572_s30, 4  ;;  %s490_s4 = int_to_ptr.vmem [resolvable:$false] %s489_s4 }
 0x110   : > { %s491_s5 = scalar_lea.vmem %s490_s4, 256  ;;  %p492_p1 = scmp.lt.s32.totalorder %s296_s27, %s490_s4 }
 0x111   : > { %p487_p13 = pnand %p486_p11, %p633_p4  ;;  %p493_p2 = scmp.lt.s32.totalorder %s491_s5, %s485_s29 }
 0x113   : > { %p488_p0 = pneg %p487_p13  ;;  %p494_p3 = por %p493_p2, %p492_p1 }
 0x115   : > { %p495_p5 = pnand %p494_p3, %p488_p0 }
 0x117   : > { %498 = shalt.err (!%p495_p5)
}
 0x118   : > { %s499_s15 = scalar_lea.hbm %s293_s26, 128  ;;  %s503_s8 = scalar_lea.hbm %s728_s3, 256 }
 0x119   : > { %p500_p6 = scmp.ne.s32.totalorder %s293_s26, %s499_s15  ;;  %p504_p12 = scmp.lt.s32.totalorder %s293_s26, %s728_s3 }
 0x11a   : > { %p505_p10 = scmp.lt.s32.totalorder %s503_s8, %s499_s15 }
 0x11b   : > { %p501_p7 = pnand %p500_p6, %p633_p4 }
 0x11c   : > { %p506_p11 = por %p505_p10, %p504_p12 }
 0x11d   : > { %p502_p9 = pneg %p501_p7 }
 0x11f   : > { %p507_p13 = pnand %p506_p11, %p502_p9 }
 0x121   : > { %510 = shalt.err (!%p507_p13)
}
 0x122   : > { %390 = dma.vmem_to_hbm [thread:$0]  (%p633_p4), %s296_s27, 128, %s293_s26, %s281_s28  }
 0x123 PF: > { %p402_p0 = scmp.ge.s32.totalorder %s565_s17, 2  ;;  %s307_s11 = sand.u32 1, %s545_s12  }
 0x124   : > { %s308_s18 = scalar_lea.sflag [#allocation4], %s307_s11 }
 0x125   : > { %p397_p1 = pnand %p402_p0, %p640_p8 }
 0x127   : > { %p398_p2 = pneg %p397_p1 }
 0x129   : > { %540 = dma.done.wait (%p398_p2), %s308_s18, 128  }
 0x12a   : > { %542 = vsyncadd (%p398_p2), %s308_s18, 4294967168  ;;  %s17_s17 = sadd.s32 1, %s565_s17   ;;  %s733_s12 = smov %s549_s13 }
 0x12b   : > { %p14_p3 = scmp.ge.s32.totalorder %s17_s17, 4   ;;  %s734_s13 = smov %s553_s14 }
 0x12c   : > { %s735_s14 = smov %s646_s25  ;;  %s736_s15 = smov %s561_s16 }
 0x12d   : > { %s737_s16 = smov %s739_s20  ;;  %16 = sbr.rel (!%p14_p3) target bundleno = 5 (0x5), region = 78 }
 0x132   :  { %313 = vsyncpa [#allocation3], 1 }
 0x133   :  { %315 = vsyncpa [#allocation3 + $0x1], 1 }
 0x134   :  { %316 = vsyncpa [#allocation4], 1 }
 0x135   :  { %318 = vsyncpa [#allocation4 + $0x1], 1 }

</bundles_post_ra>
